<compile_context>
chip_gen: v5e
topology: v5e:2x2
jax: 0.10.0
libtpu: 0.0.40
codegen_flags: <defaults>
</compile_context>

<pallas_src>
import numpy as np
import jax
import jax.numpy as jnp
from jax import lax
from jax.experimental import pallas as pl
from jax.experimental.pallas import tpu as pltpu

_FOLD_COLS = 128  # lane-dense width of the folded (A0, A1, c) block


def _round_up(x, mult):
    return ((x + mult - 1) // mult) * mult


def _pick_tk(K, D, Np=8, stream_budget_bytes=16 << 20):
    """Pick the K-tile so the double-buffered bf16 x/w streams fit the budget.

    Per K-step streamed bytes (double-buffered bf16) = 2 * 2 * tk * (Np + D).
    Budget (16 MiB) keeps the whole kernel well under the 32 MiB scoped VMEM
    limit that is valid on v5e / v6e / v7x.  Cap 8192 per the perf review.
    """
    tk = stream_budget_bytes // (4 * (Np + D))
    tk = (tk // 256) * 256
    tk = max(256, min(int(tk), 8192))
    tk = min(tk, _round_up(K, 256))
    return int(tk)


# ----------------------------------------------------------------------------
# Kernel 1: image encoder (K-tiled bf16 matmul, f32 accum) + bias + L2
#           normalize + fold exp(logit_scale) AND the K=2 location encoder:
#           emits per image row [A0, A1, c, 0...] where
#             A0 = <img_scaled, loc_w[0]>, A1 = <img_scaled, loc_w[1]>,
#             c  = <img_scaled, loc_b>
#   x: (Np, Kp) bf16, w: (Kp, D) bf16, b/lb: (1, D) f32, lw: (2, D) f32
#   -> ac: (Np, 128) f32
# ----------------------------------------------------------------------------
def _image_encode_fold_kernel(scale_ref, x_ref, w_ref, b_ref, lw_ref, lb_ref,
                              ac_ref, acc_ref):
    k = pl.program_id(0)

    @pl.when(k == 0)
    def _():
        acc_ref[...] = jnp.zeros_like(acc_ref)

    # bf16 x bf16 -> f32 accumulation on the MXU
    acc_ref[...] += jnp.dot(x_ref[...], w_ref[...],
                            preferred_element_type=jnp.float32)

    @pl.when(k == pl.num_programs(0) - 1)
    def _():
        feats = acc_ref[...] + b_ref[...]                       # (Np, D) f32
        sq = jnp.sum(feats * feats, axis=1, keepdims=True)      # XLU reduce
        # torch F.normalize: x / max(||x||, eps), eps=1e-12
        #   == x * rsqrt(max(||x||^2, eps^2))      (rsqrt -> EUP slot)
        inv = lax.rsqrt(jnp.maximum(sq, jnp.float32(1e-24)))
        scaled = feats * (jnp.exp(scale_ref[0]) * inv)          # (Np, D) f32
        # Fold the (2, D) location weights / bias onto the image side (exact
        # f32 via elementwise multiply + lane reduce; no MXU needed).
        a0 = jnp.sum(scaled * lw_ref[0:1, :], axis=1, keepdims=True)  # (Np,1)
        a1 = jnp.sum(scaled * lw_ref[1:2, :], axis=1, keepdims=True)
        c = jnp.sum(scaled * lb_ref[...], axis=1, keepdims=True)
        np_, fc = ac_ref.shape
        col = lax.broadcasted_iota(jnp.int32, (np_, fc), 1)
        ac_ref[...] = jnp.where(col == 0, a0,
                                jnp.where(col == 1, a1,
                                          jnp.where(col == 2, c, 0.0)))


def image_encode_fold(x_bf16, w_bf16, b, loc_w, loc_b, logit_scale, *, tk):
    """x: (Np, Kp) bf16, w: (Kp, D) bf16 -> folded ac: (Np, 128) f32."""
    Np, Kp = x_bf16.shape
    _, D = w_bf16.shape
    assert Kp % tk == 0
    nk = Kp // tk
    scale = jnp.reshape(logit_scale.astype(jnp.float32), (1,))
    return pl.pallas_call(
        _image_encode_fold_kernel,
        out_shape=jax.ShapeDtypeStruct((Np, _FOLD_COLS), jnp.float32),
        grid_spec=pltpu.PrefetchScalarGridSpec(
            num_scalar_prefetch=0,
            grid=(nk,),
            in_specs=[
                pl.BlockSpec(memory_space=pltpu.SMEM),            # logit_scale
                pl.BlockSpec((Np, tk), lambda k: (0, k)),          # x tile
                pl.BlockSpec((tk, D), lambda k: (k, 0)),           # w tile (streamed)
                pl.BlockSpec((1, D), lambda k: (0, 0)),            # img bias (resident)
                pl.BlockSpec((2, D), lambda k: (0, 0)),            # loc_w (resident)
                pl.BlockSpec((1, D), lambda k: (0, 0)),            # loc_b (resident)
            ],
            out_specs=pl.BlockSpec((Np, _FOLD_COLS), lambda k: (0, 0)),
            scratch_shapes=[pltpu.VMEM((Np, D), jnp.float32)],
        ),
        compiler_params=pltpu.CompilerParams(
            dimension_semantics=("arbitrary",),                    # K is a reduction
            vmem_limit_bytes=32 * 1024 * 1024),
    )(scale, x_bf16, w_bf16, b, loc_w, loc_b)


# ----------------------------------------------------------------------------
# Kernel 2: similarity over the gallery, fully folded.
#   quad: (8,) f32 SMEM = [g00, g01, g11, u0, u1, ||loc_b||^2, 0, 0]
#   ac:   (Np, 128) f32 resident = [A0 | A1 | c | 0...]
#   loc:  (2, Mp) f32, per-tile (2, tm)  (gallery axis lane-dense)
#   out:  (Np, Mp) f32, per-tile (Np, tm) lane-dense
# ----------------------------------------------------------------------------
def _similarity_kernel(quad_ref, ac_ref, loc_ref, out_ref):
    lat = loc_ref[0:1, :]                                        # (1, tm)
    lon = loc_ref[1:2, :]                                        # (1, tm)
    g00 = quad_ref[0]
    g01 = quad_ref[1]
    g11 = quad_ref[2]
    u0 = quad_ref[3]
    u1 = quad_ref[4]
    bb = quad_ref[5]
    # ||f_loc||^2 as a quadratic in (lat, lon)  -- pure VPU work
    nsq = (g00 * lat * lat + (2.0 * g01) * (lat * lon) + g11 * lon * lon
           + (2.0 * u0) * lat + (2.0 * u1) * lon + bb)           # (1, tm)
    inv = lax.rsqrt(jnp.maximum(nsq, jnp.float32(1e-24)))        # EUP
    a0 = ac_ref[:, 0:1]                                          # (Np, 1)
    a1 = ac_ref[:, 1:2]
    c = ac_ref[:, 2:3]
    sim = (a0 * lat + a1 * lon + c) * inv                        # (Np, tm)
    out_ref[...] = sim.astype(out_ref.dtype)


def similarity_logits(ac, loc_t, quad, *, tm):
    """ac: (Np, 128) f32, loc_t: (2, Mp) f32, quad: (8,) f32 -> (Np, Mp) f32."""
    Np, _ = ac.shape
    _, Mp = loc_t.shape
    assert Mp % tm == 0
    nm = Mp // tm
    return pl.pallas_call(
        _similarity_kernel,
        out_shape=jax.ShapeDtypeStruct((Np, Mp), jnp.float32),
        grid_spec=pltpu.PrefetchScalarGridSpec(
            num_scalar_prefetch=0,
            grid=(nm,),
            in_specs=[
                pl.BlockSpec(memory_space=pltpu.SMEM),             # quad coeffs
                pl.BlockSpec((Np, _FOLD_COLS), lambda j: (0, 0)),  # ac (resident)
                pl.BlockSpec((2, tm), lambda j: (0, j)),           # gallery tile
            ],
            out_specs=pl.BlockSpec((Np, tm), lambda j: (0, j)),    # lane-dense out
        ),
        compiler_params=pltpu.CompilerParams(
            dimension_semantics=("parallel",),                     # split gallery on v7x
            vmem_limit_bytes=32 * 1024 * 1024),
    )(quad, ac, loc_t)


# ----------------------------------------------------------------------------
# GeoCLIP wrapper (parameters initialized deterministically in-script)
# ----------------------------------------------------------------------------
class GeoCLIPPallas:
    def __init__(self, key, img_in_dim, loc_in_dim=2, embed_dim=128,
                 queue_size=64, tk=None, tm=None):
        k1, k2, k3, k4, k5 = jax.random.split(key, 5)
        self.embed_dim = embed_dim
        self.img_in_dim = img_in_dim
        # logit_scale = log(1 / 0.07), as in the reference __init__
        self.logit_scale = jnp.asarray(np.log(1.0 / 0.07), dtype=jnp.float32)
        # Image encoder: flatten + linear (f32 master weights)
        self.img_w = (jax.random.normal(k1, (img_in_dim, embed_dim),
                                        dtype=jnp.float32)
                      / np.sqrt(img_in_dim)).astype(jnp.float32)
        self.img_b = jax.random.normal(k2, (1, embed_dim),
                                       dtype=jnp.float32) * 0.01
        # Location encoder: linear on (lat, lon)
        self.loc_w = (jax.random.normal(k3, (loc_in_dim, embed_dim),
                                        dtype=jnp.float32)
                      / np.sqrt(loc_in_dim)).astype(jnp.float32)
        self.loc_b = jax.random.normal(k4, (1, embed_dim),
                                       dtype=jnp.float32) * 0.01
        # Precomputed quadratic-form coefficients for ||loc @ loc_w + loc_b||^2
        G = jnp.dot(self.loc_w, self.loc_w.T, precision=lax.Precision.HIGHEST)
        u = jnp.dot(self.loc_w, self.loc_b.T,
                    precision=lax.Precision.HIGHEST).reshape(loc_in_dim)
        bb = jnp.sum(self.loc_b * self.loc_b)
        self.quad = jnp.stack([G[0, 0], G[0, 1], G[1, 1], u[0], u[1], bb,
                               jnp.float32(0.0), jnp.float32(0.0)]
                              ).astype(jnp.float32)
        # K-tile (cap 8192 per perf review) + pre-padded bf16 image weight
        self.tk = tk if tk is not None else _pick_tk(img_in_dim, embed_dim)
        self.Kp = _round_up(img_in_dim, self.tk)
        self.img_w_bf16 = (jnp.zeros((self.Kp, embed_dim), jnp.bfloat16)
                           .at[:img_in_dim, :]
                           .set(self.img_w.astype(jnp.bfloat16)))
        # Gallery tile override (None -> auto, capped at 4096 lane-dense cols)
        self.tm = tm
        # GPS queue buffer (unused by forward; kept for completeness)
        q = jax.random.normal(k5, (2, queue_size), dtype=jnp.float32)
        self.gps_queue = q / jnp.linalg.norm(q, axis=0, keepdims=True)
        self.gps_queue_ptr = jnp.zeros((1,), dtype=jnp.int32)
        # TODO(synk): dequeue_and_enqueue / predict (file & image IO, softmax
        # + topk glue) are not part of the forward hot path; not kernelized.

    def forward(self, image, location):
        """image: (n, 3, H, W) NCHW, location: (m, 2) -> logits (n, m)."""
        n = image.shape[0]
        K = int(np.prod(image.shape[1:]))
        m = location.shape[0]
        assert K == self.img_in_dim

        # --- image path: pad (n -> mult of 8, K -> Kp), cast to bf16 (glue) ---
        # TODO(synk): when activation shapes are static/huge, pre-pad outside
        # the hot loop to avoid this extra HBM pass over the bf16 activation.
        Np = _round_up(max(n, 1), 8)
        x = image.reshape(n, K).astype(jnp.bfloat16)
        x_p = jnp.zeros((Np, self.Kp), jnp.bfloat16).at[:n, :K].set(x)
        ac = image_encode_fold(x_p, self.img_w_bf16, self.img_b,
                               self.loc_w, self.loc_b, self.logit_scale,
                               tk=self.tk)

        # --- gallery path: lane-dense (2, Mp) layout, large tm tiles ---
        tm = self.tm if self.tm is not None else min(
            4096, _round_up(max(m, 1), 128))
        tm = max(128, (int(tm) // 128) * 128)
        Mp = _round_up(max(m, 1), tm)
        loc_t = (jnp.zeros((2, Mp), jnp.float32)
                 .at[:, :m].set(location.astype(jnp.float32).T))
        # NOTE: padded gallery columns hold normalized-bias logits, not zeros;
        # they are always sliced off below (never softmax the unsliced block).
        logits_p = similarity_logits(ac, loc_t, self.quad, tm=tm)
        return logits_p[:n, :m]


# ----------------------------------------------------------------------------
# Reference (plain JAX; bf16 image matmul like the kernel, f32 elsewhere)
# ----------------------------------------------------------------------------
def _forward_ref(model, image, location):
    n = image.shape[0]
    x = image.reshape(n, -1).astype(jnp.float32)
    f_img = jnp.dot(x.astype(jnp.bfloat16), model.img_w.astype(jnp.bfloat16),
                    preferred_element_type=jnp.float32) + model.img_b
    inv_i = lax.rsqrt(jnp.maximum(
        jnp.sum(f_img * f_img, axis=1, keepdims=True), 1e-24))
    img_n = f_img * (jnp.exp(model.logit_scale) * inv_i)

    loc = location.astype(jnp.float32)
    f_loc = jnp.dot(loc, model.loc_w,
                    precision=lax.Precision.HIGHEST) + model.loc_b
    inv_l = lax.rsqrt(jnp.maximum(
        jnp.sum(f_loc * f_loc, axis=1, keepdims=True), 1e-24))
    loc_n = f_loc * inv_l

    return jnp.dot(img_n, loc_n.T, precision=lax.Precision.HIGHEST,
                   preferred_element_type=jnp.float32)


if __name__ == "__main__":
    key = jax.random.PRNGKey(0)
    k_img, k_loc, k_param = jax.random.split(key, 3)

    # Small shapes consistent with the forward signature:
    #   image: (n, 3, H, W) NCHW, location: (m, 2)
    n, C, H, W = 2, 3, 16, 16          # K = 768
    m, embed_dim = 300, 128            # tm=128 -> Mp=384, 3 gallery tiles

    image = jax.random.normal(k_img, (n, C, H, W), dtype=jnp.float32)
    location = jax.random.normal(k_loc, (m, 2), dtype=jnp.float32) * 90.0

    # tk=256 so the K-reduction grid has 3 steps (exercises the accumulator
    # init/finalize path); tm=128 exercises multiple gallery tiles.
    model = GeoCLIPPallas(k_param, img_in_dim=C * H * W, loc_in_dim=2,
                          embed_dim=embed_dim, queue_size=64, tk=256, tm=128)

    logits = jax.block_until_ready(model.forward(image, location))

    ref = _forward_ref(model, image, location)
    np.testing.assert_allclose(np.asarray(logits), np.asarray(ref),
                               rtol=2e-2, atol=2e-2)
    assert logits.shape == (n, m)

    print("KERNEL_OK")
</pallas_src>

<mosaic_0001>
module attributes {stable_mosaic.version = 11 : i64} {
  func.func @_image_encode_fold_kernel(%arg0: i32, %arg1: memref<1xf32, #tpu.memory_space<smem>>, %arg2: memref<8x256xbf16, #tpu.memory_space<vmem>>, %arg3: memref<256x128xbf16, #tpu.memory_space<vmem>>, %arg4: memref<1x128xf32, #tpu.memory_space<vmem>>, %arg5: memref<2x128xf32, #tpu.memory_space<vmem>>, %arg6: memref<1x128xf32, #tpu.memory_space<vmem>>, %arg7: memref<8x128xf32, #tpu.memory_space<vmem>>, %arg8: memref<8x128xf32, #tpu.memory_space<vmem>>) attributes {dimension_semantics = [#tpu.dimension_semantics<arbitrary>], iteration_bounds = array<i64: 3>, scalar_prefetch = 0 : i64, scratch_operands = 1 : i64, tpu.core_type = #tpu.core_type<tc>, window_params = [{transform_indices = @transform_0, window_bounds = array<i64: 1>}, {transform_indices = @transform_1, window_bounds = array<i64: 8, 256>}, {transform_indices = @transform_2, window_bounds = array<i64: 256, 128>}, {pipeline_mode = #tpu.pipeline_mode<synchronous>, transform_indices = @transform_3, window_bounds = array<i64: 1, 128>}, {pipeline_mode = #tpu.pipeline_mode<synchronous>, transform_indices = @transform_4, window_bounds = array<i64: 2, 128>}, {pipeline_mode = #tpu.pipeline_mode<synchronous>, transform_indices = @transform_5, window_bounds = array<i64: 1, 128>}, {pipeline_mode = #tpu.pipeline_mode<synchronous>, transform_indices = @transform_6, window_bounds = array<i64: 8, 128>}]} {
    %c0_i32 = arith.constant 0 : i32
    %0 = arith.cmpi eq, %arg0, %c0_i32 : i32
    %1 = arith.extui %0 : i1 to i32
    %c0_i32_0 = arith.constant 0 : i32
    %2 = arith.cmpi ne, %1, %c0_i32_0 : i32
    scf.if %2 {
      %cst_9 = arith.constant 0.000000e+00 : f32
      %12 = vector.broadcast %cst_9 : f32 to vector<8x128xf32>
      %c0_10 = arith.constant 0 : index
      %c0_11 = arith.constant 0 : index
      %13 = vector.load %arg8[%c0_10, %c0_11] : memref<8x128xf32, #tpu.memory_space<vmem>>, vector<8x128xf32>
      tpu.vector_store %arg8[%c0_10, %c0_11], %12 {strides = array<i32>} : memref<8x128xf32, #tpu.memory_space<vmem>>, vector<8x128xf32>,
    } else {
    }
    %c0 = arith.constant 0 : index
    %c0_1 = arith.constant 0 : index
    %3 = vector.load %arg8[%c0, %c0_1] : memref<8x128xf32, #tpu.memory_space<vmem>>, vector<8x128xf32>
    %c0_2 = arith.constant 0 : index
    %c0_3 = arith.constant 0 : index
    %4 = vector.load %arg2[%c0_2, %c0_3] : memref<8x256xbf16, #tpu.memory_space<vmem>>, vector<8x256xbf16>
    %c0_4 = arith.constant 0 : index
    %c0_5 = arith.constant 0 : index
    %5 = vector.load %arg3[%c0_4, %c0_5] : memref<256x128xbf16, #tpu.memory_space<vmem>>, vector<256x128xbf16>
    %cst = arith.constant dense<0.000000e+00> : vector<8x128xf32>
    %6 = tpu.matmul %4, %5, %cst {dimension_numbers = #tpu.dot_dimension_numbers<[1], [0], [0], [1], [0, 0, 1, 1], [], []>} : vector<8x256xbf16>, vector<256x128xbf16>, vector<8x128xf32> -> vector<8x128xf32>
    %7 = arith.addf %3, %6 : vector<8x128xf32>
    %c0_6 = arith.constant 0 : index
    %c0_7 = arith.constant 0 : index
    %8 = vector.load %arg8[%c0_6, %c0_7] : memref<8x128xf32, #tpu.memory_space<vmem>>, vector<8x128xf32>
    tpu.vector_store %arg8[%c0_6, %c0_7], %7 {strides = array<i32>} : memref<8x128xf32, #tpu.memory_space<vmem>>, vector<8x128xf32>,
    %c2_i32 = arith.constant 2 : i32
    %9 = arith.cmpi eq, %arg0, %c2_i32 : i32
    %10 = arith.extui %9 : i1 to i32
    %c0_i32_8 = arith.constant 0 : i32
    %11 = arith.cmpi ne, %10, %c0_i32_8 : i32
    scf.if %11 {
      %c0_9 = arith.constant 0 : index
      %c0_10 = arith.constant 0 : index
      %12 = vector.load %arg8[%c0_9, %c0_10] : memref<8x128xf32, #tpu.memory_space<vmem>>, vector<8x128xf32>
      %c0_11 = arith.constant 0 : index
      %c0_12 = arith.constant 0 : index
      %13 = vector.load %arg4[%c0_11, %c0_12] : memref<1x128xf32, #tpu.memory_space<vmem>>, vector<1x128xf32>
      %14 = vector.broadcast %13 : vector<1x128xf32> to vector<8x128xf32>
      %15 = arith.addf %12, %14 : vector<8x128xf32>
      %16 = arith.mulf %15, %15 : vector<8x128xf32>
      %cst_13 = arith.constant dense<0.000000e+00> : vector<8xf32>
      %17 = vector.multi_reduction <add>, %16, %cst_13 [1] : vector<8x128xf32> to vector<8xf32>
      %18 = vector.shape_cast %17 : vector<8xf32> to vector<8x1xf32>
      %cst_14 = arith.constant 1.000000e-24 : f32
      %19 = vector.broadcast %cst_14 : f32 to vector<8x1xf32>
      %20 = arith.maximumf %18, %19 : vector<8x1xf32>
      %21 = math.rsqrt %20 : vector<8x1xf32>
      %c0_15 = arith.constant 0 : index
      %22 = memref.load %arg1[%c0_15] : memref<1xf32, #tpu.memory_space<smem>>
      %23 = math.exp %22 : f32
      %24 = vector.broadcast %23 : f32 to vector<8x1xf32>
      %25 = arith.mulf %24, %21 : vector<8x1xf32>
      %26 = vector.broadcast %25 : vector<8x1xf32> to vector<8x128xf32>
      %27 = arith.mulf %15, %26 : vector<8x128xf32>
      %c0_16 = arith.constant 0 : index
      %c0_17 = arith.constant 0 : index
      %28 = vector.load %arg5[%c0_16, %c0_17] : memref<2x128xf32, #tpu.memory_space<vmem>>, vector<1x128xf32>
      %29 = vector.broadcast %28 : vector<1x128xf32> to vector<8x128xf32>
      %30 = arith.mulf %27, %29 : vector<8x128xf32>
      %cst_18 = arith.constant dense<0.000000e+00> : vector<8xf32>
      %31 = vector.multi_reduction <add>, %30, %cst_18 [1] : vector<8x128xf32> to vector<8xf32>
      %32 = vector.shape_cast %31 : vector<8xf32> to vector<8x1xf32>
      %c1 = arith.constant 1 : index
      %c0_19 = arith.constant 0 : index
      %33 = vector.load %arg5[%c1, %c0_19] : memref<2x128xf32, #tpu.memory_space<vmem>>, vector<1x128xf32>
      %34 = vector.broadcast %33 : vector<1x128xf32> to vector<8x128xf32>
      %35 = arith.mulf %27, %34 : vector<8x128xf32>
      %cst_20 = arith.constant dense<0.000000e+00> : vector<8xf32>
      %36 = vector.multi_reduction <add>, %35, %cst_20 [1] : vector<8x128xf32> to vector<8xf32>
      %37 = vector.shape_cast %36 : vector<8xf32> to vector<8x1xf32>
      %c0_21 = arith.constant 0 : index
      %c0_22 = arith.constant 0 : index
      %38 = vector.load %arg6[%c0_21, %c0_22] : memref<1x128xf32, #tpu.memory_space<vmem>>, vector<1x128xf32>
      %39 = vector.broadcast %38 : vector<1x128xf32> to vector<8x128xf32>
      %40 = arith.mulf %27, %39 : vector<8x128xf32>
      %cst_23 = arith.constant dense<0.000000e+00> : vector<8xf32>
      %41 = vector.multi_reduction <add>, %40, %cst_23 [1] : vector<8x128xf32> to vector<8xf32>
      %42 = vector.shape_cast %41 : vector<8xf32> to vector<8x1xf32>
      %43 = tpu.iota {dimensions = array<i32: 1>} : vector<8x128xi32>
      %c0_i32_24 = arith.constant 0 : i32
      %44 = vector.broadcast %c0_i32_24 : i32 to vector<8x128xi32>
      %45 = arith.cmpi eq, %43, %44 : vector<8x128xi32>
      %c1_i32 = arith.constant 1 : i32
      %46 = vector.broadcast %c1_i32 : i32 to vector<8x128xi32>
      %47 = arith.cmpi eq, %43, %46 : vector<8x128xi32>
      %c2_i32_25 = arith.constant 2 : i32
      %48 = vector.broadcast %c2_i32_25 : i32 to vector<8x128xi32>
      %49 = arith.cmpi eq, %43, %48 : vector<8x128xi32>
      %cst_26 = arith.constant 0.000000e+00 : f32
      %50 = vector.shape_cast %42 : vector<8x1xf32> to vector<8x1xf32>
      %51 = vector.broadcast %50 : vector<8x1xf32> to vector<8x128xf32>
      %52 = vector.broadcast %cst_26 : f32 to vector<8x128xf32>
      %53 = arith.select %49, %51, %52 : vector<8x128xi1>, vector<8x128xf32>
      %54 = vector.shape_cast %37 : vector<8x1xf32> to vector<8x1xf32>
      %55 = vector.broadcast %54 : vector<8x1xf32> to vector<8x128xf32>
      %56 = arith.select %47, %55, %53 : vector<8x128xi1>, vector<8x128xf32>
      %57 = vector.shape_cast %32 : vector<8x1xf32> to vector<8x1xf32>
      %58 = vector.broadcast %57 : vector<8x1xf32> to vector<8x128xf32>
      %59 = arith.select %45, %58, %56 : vector<8x128xi1>, vector<8x128xf32>
      %c0_27 = arith.constant 0 : index
      %c0_28 = arith.constant 0 : index
      %60 = vector.load %arg7[%c0_27, %c0_28] : memref<8x128xf32, #tpu.memory_space<vmem>>, vector<8x128xf32>
      tpu.vector_store %arg7[%c0_27, %c0_28], %59 {strides = array<i32>} : memref<8x128xf32, #tpu.memory_space<vmem>>, vector<8x128xf32>,
    } else {
    }
    return
  }
  func.func @transform_0(%arg0: i32) -> i32 {
    %c0_i32 = arith.constant 0 : i32
    %c0_i32_0 = arith.constant 0 : i32
    return %c0_i32 : i32
  }
  func.func @transform_1(%arg0: i32) -> (i32, i32) {
    %c0_i32 = arith.constant 0 : i32
    %c0_i32_0 = arith.constant 0 : i32
    return %c0_i32, %arg0 : i32, i32
  }
  func.func @transform_2(%arg0: i32) -> (i32, i32) {
    %c0_i32 = arith.constant 0 : i32
    %c0_i32_0 = arith.constant 0 : i32
    return %arg0, %c0_i32 : i32, i32
  }
  func.func @transform_3(%arg0: i32) -> (i32, i32) {
    %c0_i32 = arith.constant 0 : i32
    %c0_i32_0 = arith.constant 0 : i32
    %c0_i32_1 = arith.constant 0 : i32
    return %c0_i32, %c0_i32_0 : i32, i32
  }
  func.func @transform_4(%arg0: i32) -> (i32, i32) {
    %c0_i32 = arith.constant 0 : i32
    %c0_i32_0 = arith.constant 0 : i32
    %c0_i32_1 = arith.constant 0 : i32
    return %c0_i32, %c0_i32_0 : i32, i32
  }
  func.func @transform_5(%arg0: i32) -> (i32, i32) {
    %c0_i32 = arith.constant 0 : i32
    %c0_i32_0 = arith.constant 0 : i32
    %c0_i32_1 = arith.constant 0 : i32
    return %c0_i32, %c0_i32_0 : i32, i32
  }
  func.func @transform_6(%arg0: i32) -> (i32, i32) {
    %c0_i32 = arith.constant 0 : i32
    %c0_i32_0 = arith.constant 0 : i32
    %c0_i32_1 = arith.constant 0 : i32
    return %c0_i32, %c0_i32_0 : i32, i32
  }
}

</mosaic_0001>

<bundles_post_ra>
// kernel: tpu_custom_call.1
= control target key start
LH: loop header
LB: loop body
LE: loop exit
PB: predicated region body
PF: predicated region fallthrough
CT: control target
= control target key end

     0   :  { %s1113_s0 = inlined_call_operand.<no memory space> [shape: f32[1], index: 0, kind: input, shape index: {}]   ;;  %s1114_s1 = inlined_call_operand.hbm [shape: bf16[8,768], index: 1, kind: input, shape index: {}]   ;;  %s1115_s2 = inlined_call_operand.hbm [shape: bf16[768,128], index: 2, kind: input, shape index: {}]   ;;  %s1116_s3 = inlined_call_operand.vmem [shape: f32[1,128], index: 3, kind: input, shape index: {}]   ;;  %s1117_s4 = inlined_call_operand.vmem [shape: f32[2,128], index: 4, kind: input, shape index: {}]   ;;  %s1118_s5 = inlined_call_operand.vmem [shape: f32[1,128], index: 5, kind: input, shape index: {}]   ;;  %s1119_s6 = inlined_call_operand.hbm [shape: f32[8,128], index: 6, kind: output, shape index: {}]  }
   0x1   :  { %11 = sst [smem:[#allocation3]] %s1113_s0 }
   0x2   :  { %12 = vsyncpa [#allocation5], 0 }
   0x3   :  { %14 = vsyncpa [#allocation5 + $0x1], 0 }
   0x4   :  { %15 = vsyncpa [#allocation8], 0 }
   0x5   :  { %17 = vsyncpa [#allocation8 + $0x1], 0 }
   0x6   :  { %18 = vsyncpa [#allocation6], 0  ;;  %s951_s23 = smov 0   ;;  %s953_s24 = smov 0  }
   0x7   :  { %s955_s25 = smov 0   ;;  %s957_s26 = smov 0  }
   0x8 LB: > { %s970_s0 = sadd.s32 4294967295, %s907_s26   ;;  %s973_s27 = sadd.s32 1, %s907_s26   ;;  %s907_s26 = sphi %s957_s26, %s1127_s26   ;;  %s903_s25 = sphi %s955_s25, %s1126_s25   ;;  %s899_s24 = sphi %s953_s24, %s1125_s24   ;;  %s895_s23 = sphi %s951_s23, %s1124_s23  }
   0x9   : > { %s49_s28 = ssub.s32 %s907_s26, %s973_s27  ;;  %s52_s29 = sadd.s32 1, %s903_s25 }
   0xa   : > { %p50_p0 = scmp.eq.s32.totalorder %s49_s28, 0  ;;  %p59_p1 = scmp.ne.s32.totalorder %s903_s25, %s899_s24 }
   0xb   : > { %p60_p2 = scmp.eq.s32.totalorder %s907_s26, 0  ;;  %p65_p3 = scmp.ne.s32.totalorder %s899_s24, %s895_s23 }
   0xc   : > { %s983_s30 = scalar_select %p50_p0, %s903_s25, %s52_s29  }
   0xd   : > { %p985_p4 = por %p60_p2, %p59_p1  ;;  %p66_p5 = scmp.eq.s32.totalorder %s970_s0, 0 }
   0xe   : > { %p730_p6 = scmp.lt.s32.totalorder %s907_s26, 3  ;;  %s996_s9 = sand.u32 1, %s903_s25  }
   0xf   : > { %p991_p7 = por %p66_p5, %p65_p3  ;;  %s616_s10 = sshll.u32 %s996_s9, 3 }
  0x10   : > { %s695_s11 = sshll.u32 %s907_s26, 3  ;;  %s215_s15 = scalar_lea.vmem [#allocation4], %s616_s10 }
  0x11   : > { %s220_s14 = scalar_lea.hbm %s1114_s1, %s695_s11  ;;  %s224_s16 = sshll.u32 %s215_s15, 4  ;;  %s225_s16 = int_to_ptr.vmem [resolvable:$true] %s224_s16 }
  0x12   : > { %s222_s17 = sshll.u32 %s220_s14, 4  ;;  %p1005_p8 = pnand %p730_p6, %p985_p4  ;;  %s223_s17 = int_to_ptr.hbm [resolvable:$true] %s222_s17 }
  0x13   : > { %p622_p9 = scmp.ge.s32.totalorder %s907_s26, 1  ;;  %p251_p10 = scmp.lt.s32.totalorder %s907_s26, 4 }
  0x14   : > { %s212_s19 = scalar_lea.sflag [#allocation5], %s996_s9  ;;  %s777_s20 = sshra.s32 %s223_s17, 4  ;;  %s778_s20 = int_to_ptr.hbm [resolvable:$true] %s777_s20 }
  0x15   : > { %s779_s21 = scalar_lea.hbm %s778_s20, 8  ;;  %p781_p12 = pneg %p1005_p8 }
  0x16   : > { %p780_p11 = scmp.ne.s32.totalorder %s778_s20, %s779_s21  ;;  %s784_s28 = scalar_lea.hbm %s1114_s1, 24 }
  0x17   : > { %p785_p1 = scmp.lt.s32.totalorder %s778_s20, %s1114_s1  ;;  %p786_p2 = scmp.lt.s32.totalorder %s784_s28, %s779_s21 }
  0x18   : > { %p782_p13 = pnand %p781_p12, %p780_p11 }
  0x19   : > { %p787_p3 = por %p786_p2, %p785_p1 }
  0x1a   : > { %p783_p0 = pneg %p782_p13 }
  0x1c   : > { %p788_p4 = pnand %p787_p3, %p783_p0 }
  0x1e   : > { %791 = shalt.err (!%p788_p4)
}
  0x1f   : > { %726 = dma.hbm_to_vmem [thread:$0]  (!%p1005_p8), %s223_s17, 128, %s225_s16, %s212_s19  }
  0x20   : > { %p1029_p5 = pnand %p622_p9, %p251_p10  ;;  %s619_s11 = sshll.u32 %s996_s9, 7 }
  0x21   : > { %s696_s12 = sshll.u32 %s907_s26, 7  ;;  %s235_s20 = scalar_lea.vmem [#allocation7], %s619_s11 }
  0x22   : > { %s240_s15 = scalar_lea.hbm %s1115_s2, %s696_s12  ;;  %s243_s21 = sshll.u32 %s235_s20, 4  ;;  %s244_s21 = int_to_ptr.vmem [resolvable:$true] %s243_s21 }
  0x23   : > { %s241_s22 = sshll.u32 %s240_s15, 4  ;;  %s232_s23 = scalar_lea.sflag [#allocation8], %s996_s9  ;;  %s242_s22 = int_to_ptr.hbm [resolvable:$true] %s241_s22 }
  0x24   : > { %s807_s28 = sshra.s32 %s242_s22, 4  ;;  %s814_s19 = scalar_lea.hbm %s1115_s2, 384  ;;  %s808_s28 = int_to_ptr.hbm [resolvable:$true] %s807_s28 }
  0x25   : > { %s809_s16 = scalar_lea.hbm %s808_s28, 128  ;;  %p815_p11 = scmp.lt.s32.totalorder %s808_s28, %s1115_s2 }
  0x26   : > { %p810_p6 = scmp.ne.s32.totalorder %s808_s28, %s809_s16  ;;  %p816_p13 = scmp.lt.s32.totalorder %s814_s19, %s809_s16 }
  0x28   : > { %p812_p9 = pnand %p810_p6, %p781_p12  ;;  %p817_p0 = por %p816_p13, %p815_p11 }
  0x2a   : > { %p813_p10 = pneg %p812_p9 }
  0x2c   : > { %p818_p1 = pnand %p817_p0, %p813_p10 }
  0x2e   : > { %821 = shalt.err (!%p818_p1)
}
  0x2f   : > { %s909_s9 = smov 64   ;;  %s910_s11 = smov 4  }
  0x30   : > { %729 = dma.hbm_to_vmem [thread:$0]  (!%p1005_p8), %s242_s22, 2048, %s244_s21, %s232_s23, %s909_s9, %s909_s9, %s910_s11  }
  0x31   : > { %255 = sbr.rel (%p1029_p5) target bundleno = 515 (0x203), region = 44  ;;  %s257_s12 = sand.u32 (!%p1029_p5), 1, %s899_s24  }
  0x32   : > { %s623_s13 = sshll.u32 (!%p1029_p5), %s257_s12, 3  ;;  %s258_s14 = scalar_lea.sflag (!%p1029_p5), [#allocation5], %s257_s12 }
  0x33   : > { %s1053_s15 = scalar_lea.vmem (!%p1029_p5), [#allocation4], %s623_s13 }
  0x36   : > { %882 = dma.done.wait (%p991_p7), %s258_s14, 128  }
  0x37   : > { %884 = vsyncadd (%p991_p7), %s258_s14, 4294967168  ;;  %s624_s20 = sshll.u32 %s257_s12, 7  ;;  %s268_s28 = scalar_lea.sflag [#allocation8], %s257_s12 }
  0x38   : > { %s1059_s18 = scalar_lea.vmem [#allocation7], %s624_s20 }
  0x39   : > { %886 = dma.done.wait (%p991_p7), %s268_s28, 2048  }
  0x3a   : > { %888 = vsyncadd (%p991_p7), %s268_s28, 4294965248  ;;  %p625_p8 = scmp.ne.s32.totalorder %s970_s0, 0 }
  0x3c   : > { %306 = sbr.rel (%p625_p8) target bundleno = 67 (0x43), region = 56 }
  0x41   : > { %v911_v0 = vmov 0.0  }
  0x42   : > { %307 = vst [vmem:[#allocation2] sm:$0xff] %v911_v0 }
  0x43 PF: > { %v704_v1 = vld [vmem:[%s1059_s18 + $0x38] sm:$0xff]  ;;  %v703_v3 = vld [vmem:[%s1059_s18 + $0x30] sm:$0xff]  ;;  %v702_v5 = vld [vmem:[%s1059_s18 + $0x28] sm:$0xff]  ;;  %p690_p7 = scmp.ne.s32.totalorder %s970_s0, 2 }
  0x44   : > { %v712_v2 = vld [vmem:[%s1059_s18 + $0x78] sm:$0xff]  ;;  %445 = vmatpush.bf16.msra.mxu0 %v704_v1  ;;  %v711_v4 = vld [vmem:[%s1059_s18 + $0x70] sm:$0xff]  ;;  %v710_v6 = vld [vmem:[%s1059_s18 + $0x68] sm:$0xff]  ;;  %s497_s21 = sld [smem:[#allocation3]] (!%p690_p7) }
  0x45   : > { %458 = vmatpush.bf16.msra.mxu1 %v712_v2  ;;  %v701_v7 = vld [vmem:[%s1059_s18 + $0x20] sm:$0xff]  ;;  %v700_v9 = vld [vmem:[%s1059_s18 + $0x18] sm:$0xff]  ;;  %v699_v11 = vld [vmem:[%s1059_s18 + $0x10] sm:$0xff] }
  0x46   : > { %v709_v8 = vld [vmem:[%s1059_s18 + $0x60] sm:$0xff]  ;;  %v708_v10 = vld [vmem:[%s1059_s18 + $0x58] sm:$0xff]  ;;  %v707_v12 = vld [vmem:[%s1059_s18 + $0x50] sm:$0xff] }
  0x47   : > { %v698_v13 = vld [vmem:[%s1059_s18 + $0x8] sm:$0xff]  ;;  %v309_v15 = vld [vmem:[%s1053_s15] sm:$0xff]  ;;  %v697_v18 = vld [vmem:[%s1059_s18] sm:$0xff] }
  0x48   : > { %446 = vmatpush.bf16.msra.mxu0 %v703_v3  ;;  %v706_v14 = vld [vmem:[%s1059_s18 + $0x48] sm:$0xff]  ;;  %v343_v16 = vunpack.c.l.b16 %v309_v15  ;;  %v344_v17 = vunpack.c.h.b16 %v309_v15  ;;  %v705_v19 = vld [vmem:[%s1059_s18 + $0x40] sm:$0xff] }
  0x49   : > { %459 = vmatpush.bf16.msra.mxu1 %v711_v4  ;;  %v308_v23 = vld [vmem:[#allocation2] sm:$0xff] }
  0x4a   : > { %v345_v20 = vpack.c.b16 %v343_v16, %v343_v16  ;;  %v346_v21 = vpack.c.b16 %v344_v17, %v344_v17 }
  0x4c   : > { %447 = vmatpush.bf16.msra.mxu0 %v702_v5 }
  0x4d   : > { %460 = vmatpush.bf16.msra.mxu1 %v710_v6 }
  0x50   : > { %448 = vmatpush.bf16.msra.mxu0 %v701_v7 }
  0x51   : > { %461 = vmatpush.bf16.msra.mxu1 %v709_v8 }
  0x54   : > { %449 = vmatpush.bf16.msra.mxu0 %v700_v9 }
  0x55   : > { %462 = vmatpush.bf16.msra.mxu1 %v708_v10 }
  0x58   : > { %450 = vmatpush.bf16.msra.mxu0 %v699_v11 }
  0x59   : > { %463 = vmatpush.bf16.msra.mxu1 %v707_v12 }
  0x5c   : > { %451 = vmatpush.bf16.msra.mxu0 %v698_v13 }
  0x5d   : > { %464 = vmatpush.bf16.msra.mxu1 %v706_v14 }
  0x60   : > { %452 = vmatpush.bf16.msra.mxu0 %v697_v18 }
  0x61   : > { %465 = vmatpush.bf16.msra.mxu1 %v705_v19 }
  0x63   : > { %453 = vmatmul.bf16.vlgmr.msra.gmra.mxu0 %v345_v20 }
  0x64   : > { %466 = vmatmul.bf16.vlgmr.msra.gmra.mxu1 %v346_v21 }
  0xe0   : > { %v454_v22 = vpop.f32.mrf.mxu0 }
  0xe1   : > { %v467_v24 = vpop.f32.mrf.mxu1 }
  0xe2   : > { %v468_v25 = vadd.f32 %v467_v24, %v454_v22 }
  0xe4   : > { %v471_v26 = vadd.f32 %v468_v25, %v308_v23 }
  0xe5   : > { %476 = sbr.rel (%p690_p7) target bundleno = 510 (0x1fe), region = 60 }
  0xe6   : > { %472 = vst [vmem:[#allocation2] sm:$0xff] %v471_v26 }
  0xe8   : > { %v456_v27 = vpop.f32.mrf.mxu0 }
  0xe9   : > { %v469_v28 = vpop.f32.mrf.mxu1 }
  0xea   : > { %v769_v30 = vld [vmem:[%s1116_s3] ss:$0 sm:$0xff]  ;;  %v498_v33 = vstv %s497_s21  ;;  %v771_v48 = vld [vmem:[%s1117_s4 + $0x1] ss:$0 sm:$0xff]  ;;  %v522_v54 = vlaneseq }
  0xeb   : > { %v499_v34 = vmul.f32 1.442695, %v498_v33  ;;  %v770_v47 = vld [vmem:[%s1118_s5] ss:$0 sm:$0xff] }
  0xec   : > { %v772_v52 = vld [vmem:[%s1117_s4] ss:$0 sm:$0xff]  ;;  %v523_v55 = vand.u32 127, %v522_v54 }
  0xed   : > { %v477_v29 = vld [vmem:[#allocation2] sm:$0xff]  ;;  %773 = vpow2.f32 %v499_v34 }
  0xee   : > { %v482_v31 = vadd.f32 %v769_v30, %v477_v29  ;;  %vm526_vm3 = vcmp.eq.s32.totalorder %v523_v55, 2  ;;  %vm525_vm4 = vcmp.eq.s32.totalorder %v523_v55, 1  ;;  %vm524_vm5 = vcmp.eq.s32.totalorder %v523_v55, 0 }
  0xf0   : > { %v483_v32 = vmul.f32 %v482_v31, %v482_v31 }
  0xf2   : > { %484 = vadd.xlane.f32.xlu0 %v483_v32 }
  0xf3   : > { %v774_v35 = vpop.eup %773 }
  0xf4   : > { %713 = vpush %v774_v35 }
 0x125   : > { %s714_s22 = spop %713 }
 0x126   : > { %v502_v44 = vstv %s714_s22 }
 0x165   : > { %v485_v36 = vpop.xlane.xlu0 %484 }
 0x166   : > { %v486_v37 = vmax.f32 %v485_v36, 1e-24 }
 0x168   : > { %775 = vrsqrt.f32 %v486_v37  ;;  %vm493_vm1 = vweird.f32 %v486_v37 }
 0x16e   : > { %v776_v38 = vpop.eup %775 }
 0x16f   : > { %v488_v39 = vmul.f32 %v776_v38, %v486_v37  ;;  %vm494_vm0 = vweird.f32 %v776_v38 }
 0x170   : > { %vm495_vm2 = vmor %vm493_vm1, %vm494_vm0 }
 0x171   : > { %v489_v40 = vmul.f32 %v776_v38, %v488_v39 }
 0x173   : > { %v490_v41 = vmul.f32 0.5, %v489_v40 }
 0x175   : > { %v491_v42 = vsub.f32 1.5, %v490_v41 }
 0x177   : > { %v492_v43 = vmul.f32 %v776_v38, %v491_v42 }
 0x179   : > { %v496_v45 = vsel %vm495_vm2, %v776_v38, %v492_v43 }
 0x17a   : > { %v503_v46 = vmul.f32 %v502_v44, %v496_v45 }
 0x17c   : > { %v504_v49 = vmul.f32 %v503_v46, %v482_v31 }
 0x17e   : > { %v519_v50 = vmul.f32 %v770_v47, %v504_v49  ;;  %v512_v51 = vmul.f32 %v771_v48, %v504_v49  ;;  %v507_v53 = vmul.f32 %v772_v52, %v504_v49 }
 0x180   : > { %520 = vadd.xlane.f32.xlu0 %v519_v50  ;;  %513 = vadd.xlane.f32.xlu1 %v512_v51 }
 0x188   : > { %508 = vadd.xlane.f32.xlu1 %v507_v53 }
 0x1f3   : > { %v514_v56 = vpop.xlane.xlu1 %513  ;;  %v521_v57 = vpop.xlane.xlu0 %520 }
 0x1f4   : > { %v527_v58 = vsel %vm526_vm3, %v521_v57, 0.0 }
 0x1f5   : > { %v528_v59 = vsel %vm525_vm4, %v514_v56, %v527_v58 }
 0x1fb   : > { %v509_v60 = vpop.xlane.xlu1 %508 }
 0x1fc   : > { %v529_v61 = vsel %vm524_vm5, %v509_v60, %v528_v59 }
 0x1fd   : > { %530 = vst [vmem:[#allocation9] sm:$0xff] %v529_v61 }
 0x1fe PF: > { %p731_p12 = scmp.eq.s32.totalorder %s970_s0, 2  ;;  %s912_s7 = smov [#allocation9]  }
 0x1ff   : > { %s537_s9 = sshll.u32 %s912_s7, 4  ;;  %s539_s13 = sshll.u32 %s1119_s6, 4  ;;  %s538_s9 = int_to_ptr.vmem [resolvable:$true] %s537_s9  ;;  %s540_s13 = int_to_ptr.hbm [resolvable:$true] %s539_s13 }
 0x200   : > { %720 = dma.vmem_to_hbm [thread:$0]  (%p731_p12), %s538_s9, 128, %s540_s13, [#allocation6]  }
 0x201   : > { %890 = dma.done.wait (%p731_p12), [#allocation6], 128  }
 0x202   : > { %892 = vsyncadd (%p731_p12), [#allocation6], 4294967168 }
 0x203 PF: > { %p21_p2 = scmp.ge.s32.totalorder %s973_s27, 5   ;;  %s1124_s23 = smov %s899_s24 }
 0x204   : > { %s1125_s24 = smov %s903_s25  ;;  %s1126_s25 = smov %s983_s30 }
 0x205   : > { %s1127_s26 = smov %s973_s27  ;;  %23 = sbr.rel (!%p21_p2) target bundleno = 8 (0x8), region = 102 }
 0x20a   :  { %553 = vsyncpa [#allocation5], 1 }
 0x20b   :  { %555 = vsyncpa [#allocation5 + $0x1], 1 }
 0x20c   :  { %556 = vsyncpa [#allocation8], 1 }
 0x20d   :  { %558 = vsyncpa [#allocation8 + $0x1], 1 }
 0x20e   :  { %559 = vsyncpa [#allocation6], 1 }
 0x20f   :  { %561 = vsyncpa [#allocation6 + $0x1], 1 }

</bundles_post_ra>
